<compile_context>
chip_gen: v7x
topology: tpu7x:2x2x1
jax: 0.10.0
libtpu: 0.0.40
codegen_flags: <defaults>
</compile_context>

<pallas_src>
import functools

import jax
import jax.numpy as jnp
from jax.experimental import pallas as pl
from jax.experimental.pallas import tpu as pltpu


def _relu_kernel(x_ref, o_ref):
    # Elementwise ReLU on the whole VMEM tile (single VPU max per vreg; the
    # weak-typed 0.0 literal avoids forcing any dtype widening in the IR).
    o_ref[...] = jnp.maximum(x_ref[...], 0.0)


@functools.partial(jax.jit, static_argnames=())
def relu_pallas(x: jax.Array) -> jax.Array:
    """ReLU over an NCHW tensor, computed in a single-tile Pallas TPU kernel."""
    orig_shape = x.shape
    n = orig_shape[0]
    # Flatten to a 2-D lane-dense slab (N, C*H*W).  For NCHW with H=W=1 this
    # puts the channel axis on lanes; the reshape is a layout no-op under jit.
    x2d = x.reshape(n, -1)
    nelem = x2d.shape[0] * x2d.shape[1]
    itemsize = jnp.dtype(x2d.dtype).itemsize

    out2d = pl.pallas_call(
        _relu_kernel,
        out_shape=jax.ShapeDtypeStruct(x2d.shape, x2d.dtype),
        in_specs=[pl.BlockSpec(memory_space=pltpu.MemorySpace.VMEM)],
        out_specs=pl.BlockSpec(memory_space=pltpu.MemorySpace.VMEM),
        # In-place: output aliases the (single) input buffer.
        input_output_aliases={0: 0},
        # Advisory: this call is essentially free; don't schedule around it.
        cost_estimate=pl.CostEstimate(
            flops=nelem,
            transcendentals=0,
            bytes_accessed=2 * nelem * itemsize,
        ),
    )(x2d)

    return out2d.reshape(orig_shape)


if __name__ == "__main__":
    key = jax.random.PRNGKey(0)
    # Matches torch.randn(torch.Size([1, 224, 1, 1]))
    x275 = jax.random.normal(key, (1, 224, 1, 1), dtype=jnp.float32)

    # Reference computed first (kernel output aliases its input buffer).
    ref = jnp.maximum(x275, 0.0)

    out = relu_pallas(x275)
    jax.block_until_ready(out)

    # Sanity check against plain-JAX reference.
    assert out.shape == (1, 224, 1, 1)
    assert out.dtype == jnp.float32
    assert jnp.allclose(out, ref), "mismatch vs reference ReLU"

    print("KERNEL_OK")
</pallas_src>

<mosaic_0001>
module attributes {stable_mosaic.version = 11 : i64} {
  func.func @_relu_kernel(%arg0: memref<1x224xf32, #tpu.memory_space<vmem>>, %arg1: memref<1x224xf32, #tpu.memory_space<vmem>>) attributes {dimension_semantics = [], scalar_prefetch = 0 : i64, scratch_operands = 0 : i64, tpu.core_type = #tpu.core_type<tc>} {
    %c0 = arith.constant 0 : index
    %c0_0 = arith.constant 0 : index
    %0 = vector.load %arg0[%c0, %c0_0] : memref<1x224xf32, #tpu.memory_space<vmem>>, vector<1x224xf32>
    %cst = arith.constant 0.000000e+00 : f32
    %1 = vector.broadcast %cst : f32 to vector<1x224xf32>
    %2 = arith.maximumf %0, %1 : vector<1x224xf32>
    %c0_1 = arith.constant 0 : index
    %c0_2 = arith.constant 0 : index
    %3 = vector.load %arg1[%c0_1, %c0_2] : memref<1x224xf32, #tpu.memory_space<vmem>>, vector<1x224xf32>
    tpu.vector_store %arg1[%c0_1, %c0_2], %2 {strides = array<i32>} : memref<1x224xf32, #tpu.memory_space<vmem>>, vector<1x224xf32>,
    return
  }
}

</mosaic_0001>

<bundles_post_ra>
// kernel: relu_pallas.1
= control target key start
LH: loop header
LB: loop body
LE: loop exit
PB: predicated region body
PF: predicated region fallthrough
CT: control target
= control target key end

     0   :  { %v10_v0 = vlaneseq  ;;  %s35_s0 = inlined_call_operand.vmem [shape: f32[1,224], index: 0, kind: input, shape index: {}, may-alias: {0,1}]   ;;  %s36_s1 = inlined_call_operand.vmem [shape: f32[1,224], index: 1, kind: output, shape index: {}, may-alias: {0,1}]  }
   0x1   :  { %v8_v1 = vld [vmem:[%s35_s0] sm:$0x3] }
   0x2   :  { %v9_v2 = vmax.f32 %v8_v1, 0.0  ;;  %vm12_vm0 = vcmp.lt.s32.totalorder %v10_v0, 224 }
   0x4   :  { %14 = vst.msk [vmem:[%s36_s1] sm:$0x3] %vm12_vm0, %v9_v2 }

</bundles_post_ra>
